<compile_context>
chip_gen: v5e
topology: v5e:2x2
jax: 0.10.0
libtpu: 0.0.40
codegen_flags: <defaults>
</compile_context>

<pallas_src>
import functools

import jax
import jax.numpy as jnp
from jax import lax
from jax.experimental import pallas as pl
from jax.experimental.pallas import tpu as pltpu

_MIB = 1024 * 1024


# ----------------------------------------------------------------------------
# Chip-aware VMEM budgets.
# ----------------------------------------------------------------------------
def _chip_budgets():
    """Thresholds derived from the actual chip's VMEM capacity at trace time."""
    vmem_cap = None
    try:
        info = pltpu.get_tpu_info()
        vmem_cap = getattr(info, "vmem_capacity_bytes", None)
    except Exception:
        vmem_cap = None
    if vmem_cap is not None and vmem_cap >= 100 * _MIB:
        # v5e / v6e: 128 MiB VMEM per core.  Fused path holds ~4x block
        # (x + out, each double-buffered) -> 26 MiB block fits under 110 MiB.
        return dict(fuse_block=26 * _MIB, apply_tile=8 * _MIB,
                    vmem_limit=110 * _MIB, apply_buffers=2)
    # v7x (64 MiB per TensorCore) or unknown chip: conservative budgets that
    # preserve 2-deep pipelining (4x 11 MiB = 44 MiB < 48 MiB limit).
    return dict(fuse_block=11 * _MIB, apply_tile=4 * _MIB,
                vmem_limit=48 * _MIB, apply_buffers=3)


def _maybe_buffered_spec(block_shape, index_map, nbuf):
    """BlockSpec with optional deeper pipelining (v7x apply pass)."""
    if nbuf and nbuf > 2:
        try:
            return pl.BlockSpec(block_shape, index_map,
                                pipeline_mode=pl.Buffered(nbuf))
        except TypeError:
            pass  # older API without pipeline_mode: fall back to default depth
    return pl.BlockSpec(block_shape, index_map)


# ----------------------------------------------------------------------------
# Fused single-pass kernel (volumes whose (C, S) block fits the fuse budget).
# ----------------------------------------------------------------------------
def _se3d_fused_kernel(x_ref, w1_ref, b1_ref, w2_ref, b2_ref, o_ref, *, inv_s):
    # squeeze: AdaptiveAvgPool3d(1) == sum over flattened spatial * (1/S)
    s = jnp.sum(x_ref[0], axis=-1, keepdims=True) * inv_s            # (C, 1)
    # excitation: 1x1x1 convs == tiny matmuls (negligible FLOPs)
    h = jnp.dot(w1_ref[...], s, preferred_element_type=jnp.float32) + b1_ref[...]
    h = h * jax.nn.sigmoid(h)                                         # SiLU
    g = jnp.dot(w2_ref[...], h, preferred_element_type=jnp.float32) + b2_ref[...]
    g = jax.nn.sigmoid(g)                                             # (C, 1) f32
    # Multiply in f32 (gate stays f32); re-read of x from VMEM bounds the big
    # tile's live range across the EUP sigmoid chain.
    o_ref[0] = (x_ref[0] * g).astype(o_ref.dtype)


def _se3d_fused(x_flat, w1, b1, w2, b2, vmem_limit):
    N, C, S = x_flat.shape
    R = w1.shape[0]
    b1c = b1.reshape(R, 1)
    b2c = b2.reshape(C, 1)
    return pl.pallas_call(
        functools.partial(_se3d_fused_kernel, inv_s=1.0 / S),
        out_shape=jax.ShapeDtypeStruct((N, C, S), x_flat.dtype),
        grid=(N,),
        in_specs=[
            pl.BlockSpec((1, C, S), lambda n: (n, 0, 0)),   # x (one batch)
            pl.BlockSpec((R, C), lambda n: (0, 0)),          # w1
            pl.BlockSpec((R, 1), lambda n: (0, 0)),          # b1
            pl.BlockSpec((C, R), lambda n: (0, 0)),          # w2
            pl.BlockSpec((C, 1), lambda n: (0, 0)),          # b2
        ],
        out_specs=pl.BlockSpec((1, C, S), lambda n: (n, 0, 0)),
        compiler_params=pltpu.CompilerParams(
            dimension_semantics=("parallel",),
            vmem_limit_bytes=vmem_limit),
    )(x_flat, w1, b1c, w2, b2c)


# ----------------------------------------------------------------------------
# Tiled two-pass path (large volumes): reduce -> tiny MLP in JAX -> apply.
# ----------------------------------------------------------------------------
def _se3d_reduce_kernel(x_ref, sums_ref, *, true_s, need_mask):
    st = pl.program_id(1)
    last = pl.num_programs(1) - 1

    @pl.when(st == 0)
    def _():
        sums_ref[...] = jnp.zeros_like(sums_ref)

    xv = x_ref[0]                                                     # (C, TS)
    if need_mask:
        # Only the ragged last tile pays the iota/compare/select cost; full
        # tiles stay at one vadd per vreg.
        @pl.when(st == last)
        def _():
            ts = xv.shape[-1]
            lane = st * ts + lax.broadcasted_iota(jnp.int32, xv.shape, 1)
            xm = jnp.where(lane < true_s, xv, 0.0)
            sums_ref[0] += jnp.sum(xm, axis=-1, keepdims=True)

        @pl.when(st != last)
        def _():
            sums_ref[0] += jnp.sum(xv, axis=-1, keepdims=True)
    else:
        sums_ref[0] += jnp.sum(xv, axis=-1, keepdims=True)            # (C, 1)


def _se3d_apply_kernel(x_ref, gate_ref, o_ref):
    # (C, TS) * (C, 1) broadcast over the lane (spatial) axis, f32 multiply.
    o_ref[0] = (x_ref[0] * gate_ref[0]).astype(o_ref.dtype)


def _pick_spatial_tile(C, S, tile_bytes, itemsize):
    ts = max(128, (tile_bytes // (itemsize * C)) // 128 * 128)
    return min(ts, S)   # if S < tile, use the full (lane-exact) extent


def _se3d_tiled(x_flat, w1, b1, w2, b2, budgets, spatial_tile=None):
    N, C, S = x_flat.shape
    itemsize = x_flat.dtype.itemsize
    if spatial_tile is None:
        ts = _pick_spatial_tile(C, S, budgets["apply_tile"], itemsize)
    else:
        # Round a user-supplied tile to a multiple of 128 (or clamp to S) so
        # BlockSpecs stay legal and the apply-pass output stays lane-dense.
        ts = spatial_tile
        if ts < S:
            ts = max(128, (ts // 128) * 128)
        ts = min(ts, S)
    num_st = pl.cdiv(S, ts)
    need_mask = (S % ts) != 0
    vmem_limit = budgets["vmem_limit"]

    # ---- pass 1: per-batch channel sums (reduction axis last, "arbitrary")
    sums = pl.pallas_call(
        functools.partial(_se3d_reduce_kernel, true_s=S, need_mask=need_mask),
        out_shape=jax.ShapeDtypeStruct((N, C, 1), jnp.float32),
        grid=(N, num_st),
        in_specs=[pl.BlockSpec((1, C, ts), lambda n, st: (n, 0, st))],
        out_specs=pl.BlockSpec((1, C, 1), lambda n, st: (n, 0, 0)),
        compiler_params=pltpu.CompilerParams(
            dimension_semantics=("parallel", "arbitrary"),
            vmem_limit_bytes=vmem_limit),
    )(x_flat)

    # ---- excitation MLP, batched over N, hoisted out of the streaming loop
    mean = sums[:, :, 0] * (1.0 / S)                                  # (N, C)
    h = mean @ w1.T + b1[None, :]                                     # (N, R)
    h = h * jax.nn.sigmoid(h)                                         # SiLU
    gate = jax.nn.sigmoid(h @ w2.T + b2[None, :])                     # (N, C)
    gate = gate[:, :, None].astype(jnp.float32)                       # (N, C, 1)

    # ---- pass 2: tiled elementwise apply (both axes parallel, lane-dense out)
    nbuf = budgets["apply_buffers"]
    out = pl.pallas_call(
        _se3d_apply_kernel,
        out_shape=jax.ShapeDtypeStruct((N, C, S), x_flat.dtype),
        grid=(N, num_st),
        in_specs=[
            _maybe_buffered_spec((1, C, ts), lambda n, st: (n, 0, st), nbuf),
            pl.BlockSpec((1, C, 1), lambda n, st: (n, 0, 0)),
        ],
        out_specs=_maybe_buffered_spec((1, C, ts), lambda n, st: (n, 0, st), nbuf),
        compiler_params=pltpu.CompilerParams(
            dimension_semantics=("parallel", "parallel"),
            vmem_limit_bytes=vmem_limit),
    )(x_flat, gate)
    return out


# ----------------------------------------------------------------------------
# Public wrapper.
# ----------------------------------------------------------------------------
def squeeze_excitation_3d(x, w1, b1, w2, b2, *, mode="auto", spatial_tile=None):
    """x: (N, C, D, H, W) float32; w1: (R, C); b1: (R,); w2: (C, R); b2: (C,)."""
    N, C, D, H, W = x.shape
    S = D * H * W
    x_flat = x.reshape(N, C, S)
    budgets = _chip_budgets()

    if mode == "auto":
        block_bytes = C * S * x.dtype.itemsize
        mode = "fused" if block_bytes <= budgets["fuse_block"] else "tiled"

    if mode == "fused":
        out_flat = _se3d_fused(x_flat, w1, b1, w2, b2, budgets["vmem_limit"])
    else:
        out_flat = _se3d_tiled(x_flat, w1, b1, w2, b2, budgets,
                               spatial_tile=spatial_tile)

    return out_flat.reshape(N, C, D, H, W)


def _reference(x, w1, b1, w2, b2):
    # Pure-JAX reference of the PyTorch forward pass.
    s = jnp.mean(x, axis=(2, 3, 4))                                   # (N, C)
    h = s @ w1.T + b1                                                 # (N, R)
    h = h * jax.nn.sigmoid(h)                                         # SiLU
    g = jax.nn.sigmoid(h @ w2.T + b2)                                 # (N, C)
    return x * g[:, :, None, None, None]


if __name__ == "__main__":
    def make_inputs(key, N, C, R, D, H, W):
        kx, k1, kb1, k2, kb2 = jax.random.split(key, 5)
        x = jax.random.normal(kx, (N, C, D, H, W), dtype=jnp.float32)
        # Conv3d(C->R, k=1): weight (R, C, 1, 1, 1) -> (R, C); bias (R,)
        w1 = jax.random.normal(k1, (R, C), dtype=jnp.float32) * 0.1
        b1 = jax.random.normal(kb1, (R,), dtype=jnp.float32) * 0.1
        # Conv3d(R->C, k=1): weight (C, R, 1, 1, 1) -> (C, R); bias (C,)
        w2 = jax.random.normal(k2, (C, R), dtype=jnp.float32) * 0.1
        b2 = jax.random.normal(kb2, (C,), dtype=jnp.float32) * 0.1
        return x, w1, b1, w2, b2

    k0, k1 = jax.random.split(jax.random.PRNGKey(0), 2)

    # 1) Small volume -> fused single-pass path (auto-selected).
    x, w1, b1, w2, b2 = make_inputs(k0, 2, 8, 4, 8, 8, 8)
    out = jax.block_until_ready(squeeze_excitation_3d(x, w1, b1, w2, b2))
    ref = _reference(x, w1, b1, w2, b2)
    assert out.shape == x.shape
    assert jnp.allclose(out, ref, atol=2e-5, rtol=2e-5), "fused mismatch"

    # 2) Force the tiled two-pass path on the same shape (S = 512, TS = 128).
    out_t = jax.block_until_ready(
        squeeze_excitation_3d(x, w1, b1, w2, b2, mode="tiled", spatial_tile=128))
    assert jnp.allclose(out_t, ref, atol=2e-5, rtol=2e-5), "tiled mismatch"

    # 3) Tiled path with a ragged last spatial tile (S=216, TS=128 -> masking),
    #    plus a deliberately unaligned user tile to exercise the 128-rounding.
    x3, w13, b13, w23, b23 = make_inputs(k1, 2, 16, 8, 6, 6, 6)
    out3 = jax.block_until_ready(
        squeeze_excitation_3d(x3, w13, b13, w23, b23, mode="tiled", spatial_tile=130))
    ref3 = _reference(x3, w13, b13, w23, b23)
    assert jnp.allclose(out3, ref3, atol=2e-5, rtol=2e-5), "ragged-tile mismatch"

    print("KERNEL_OK")
</pallas_src>

<mosaic_0001>
module attributes {stable_mosaic.version = 11 : i64} {
  func.func @_se3d_fused_kernel(%arg0: i32, %arg1: memref<1x8x512xf32, #tpu.memory_space<vmem>>, %arg2: memref<4x8xf32, #tpu.memory_space<vmem>>, %arg3: memref<4x1xf32, #tpu.memory_space<vmem>>, %arg4: memref<8x4xf32, #tpu.memory_space<vmem>>, %arg5: memref<8x1xf32, #tpu.memory_space<vmem>>, %arg6: memref<1x8x512xf32, #tpu.memory_space<vmem>>) attributes {dimension_semantics = [#tpu.dimension_semantics<parallel>], iteration_bounds = array<i64: 2>, scalar_prefetch = 0 : i64, scratch_operands = 0 : i64, tpu.core_type = #tpu.core_type<tc>, window_params = [{transform_indices = @transform_0, window_bounds = array<i64: 1, 8, 512>}, {pipeline_mode = #tpu.pipeline_mode<synchronous>, transform_indices = @transform_1, window_bounds = array<i64: 4, 8>}, {pipeline_mode = #tpu.pipeline_mode<synchronous>, transform_indices = @transform_2, window_bounds = array<i64: 4, 1>}, {pipeline_mode = #tpu.pipeline_mode<synchronous>, transform_indices = @transform_3, window_bounds = array<i64: 8, 4>}, {pipeline_mode = #tpu.pipeline_mode<synchronous>, transform_indices = @transform_4, window_bounds = array<i64: 8, 1>}, {transform_indices = @transform_5, window_bounds = array<i64: 1, 8, 512>}]} {
    %c0 = arith.constant 0 : index
    %c0_0 = arith.constant 0 : index
    %c0_1 = arith.constant 0 : index
    %0 = vector.load %arg1[%c0, %c0_0, %c0_1] : memref<1x8x512xf32, #tpu.memory_space<vmem>>, vector<1x8x512xf32>
    %1 = vector.shape_cast %0 : vector<1x8x512xf32> to vector<8x512xf32>
    %cst = arith.constant dense<0.000000e+00> : vector<8xf32>
    %2 = vector.multi_reduction <add>, %1, %cst [1] : vector<8x512xf32> to vector<8xf32>
    %3 = vector.shape_cast %2 : vector<8xf32> to vector<8x1xf32>
    %cst_2 = arith.constant 0.001953125 : f32
    %4 = vector.broadcast %cst_2 : f32 to vector<8x1xf32>
    %5 = arith.mulf %3, %4 : vector<8x1xf32>
    %c0_3 = arith.constant 0 : index
    %c0_4 = arith.constant 0 : index
    %6 = vector.load %arg2[%c0_3, %c0_4] : memref<4x8xf32, #tpu.memory_space<vmem>>, vector<4x8xf32>
    %cst_5 = arith.constant dense<0.000000e+00> : vector<4x1xf32>
    %7 = tpu.matmul %6, %5, %cst_5 {dimension_numbers = #tpu.dot_dimension_numbers<[1], [0], [0], [1], [0, 0, 1, 1], [], []>} : vector<4x8xf32>, vector<8x1xf32>, vector<4x1xf32> -> vector<4x1xf32>
    %c0_6 = arith.constant 0 : index
    %c0_7 = arith.constant 0 : index
    %8 = vector.load %arg3[%c0_6, %c0_7] : memref<4x1xf32, #tpu.memory_space<vmem>>, vector<4x1xf32>
    %9 = arith.addf %7, %8 : vector<4x1xf32>
    %10 = arith.negf %9 : vector<4x1xf32>
    %11 = math.exp %10 : vector<4x1xf32>
    %cst_8 = arith.constant 1.000000e+00 : f32
    %12 = vector.broadcast %cst_8 : f32 to vector<4x1xf32>
    %13 = arith.addf %12, %11 : vector<4x1xf32>
    %14 = arith.divf %12, %13 : vector<4x1xf32>
    %15 = arith.mulf %9, %14 : vector<4x1xf32>
    %c0_9 = arith.constant 0 : index
    %c0_10 = arith.constant 0 : index
    %16 = vector.load %arg4[%c0_9, %c0_10] : memref<8x4xf32, #tpu.memory_space<vmem>>, vector<8x4xf32>
    %cst_11 = arith.constant dense<0.000000e+00> : vector<8x1xf32>
    %17 = tpu.matmul %16, %15, %cst_11 {dimension_numbers = #tpu.dot_dimension_numbers<[1], [0], [0], [1], [0, 0, 1, 1], [], []>} : vector<8x4xf32>, vector<4x1xf32>, vector<8x1xf32> -> vector<8x1xf32>
    %c0_12 = arith.constant 0 : index
    %c0_13 = arith.constant 0 : index
    %18 = vector.load %arg5[%c0_12, %c0_13] : memref<8x1xf32, #tpu.memory_space<vmem>>, vector<8x1xf32>
    %19 = arith.addf %17, %18 : vector<8x1xf32>
    %20 = arith.negf %19 : vector<8x1xf32>
    %21 = math.exp %20 : vector<8x1xf32>
    %cst_14 = arith.constant 1.000000e+00 : f32
    %22 = vector.broadcast %cst_14 : f32 to vector<8x1xf32>
    %23 = arith.addf %22, %21 : vector<8x1xf32>
    %24 = arith.divf %22, %23 : vector<8x1xf32>
    %c0_15 = arith.constant 0 : index
    %c0_16 = arith.constant 0 : index
    %c0_17 = arith.constant 0 : index
    %25 = vector.load %arg1[%c0_15, %c0_16, %c0_17] : memref<1x8x512xf32, #tpu.memory_space<vmem>>, vector<1x8x512xf32>
    %26 = vector.shape_cast %25 : vector<1x8x512xf32> to vector<8x512xf32>
    %27 = vector.broadcast %24 : vector<8x1xf32> to vector<8x512xf32>
    %28 = arith.mulf %26, %27 : vector<8x512xf32>
    %c0_18 = arith.constant 0 : index
    %c0_19 = arith.constant 0 : index
    %c0_20 = arith.constant 0 : index
    %29 = vector.load %arg6[%c0_18, %c0_19, %c0_20] : memref<1x8x512xf32, #tpu.memory_space<vmem>>, vector<1x8x512xf32>
    %30 = vector.shape_cast %29 : vector<1x8x512xf32> to vector<8x512xf32>
    %31 = vector.shape_cast %28 : vector<8x512xf32> to vector<1x8x512xf32>
    tpu.vector_store %arg6[%c0_18, %c0_19, %c0_20], %31 {strides = array<i32>} : memref<1x8x512xf32, #tpu.memory_space<vmem>>, vector<1x8x512xf32>,
    return
  }
  func.func @transform_0(%arg0: i32) -> (i32, i32, i32) {
    %c0_i32 = arith.constant 0 : i32
    %c0_i32_0 = arith.constant 0 : i32
    %c0_i32_1 = arith.constant 0 : i32
    return %arg0, %c0_i32, %c0_i32_0 : i32, i32, i32
  }
  func.func @transform_1(%arg0: i32) -> (i32, i32) {
    %c0_i32 = arith.constant 0 : i32
    %c0_i32_0 = arith.constant 0 : i32
    %c0_i32_1 = arith.constant 0 : i32
    return %c0_i32, %c0_i32_0 : i32, i32
  }
  func.func @transform_2(%arg0: i32) -> (i32, i32) {
    %c0_i32 = arith.constant 0 : i32
    %c0_i32_0 = arith.constant 0 : i32
    %c0_i32_1 = arith.constant 0 : i32
    return %c0_i32, %c0_i32_0 : i32, i32
  }
  func.func @transform_3(%arg0: i32) -> (i32, i32) {
    %c0_i32 = arith.constant 0 : i32
    %c0_i32_0 = arith.constant 0 : i32
    %c0_i32_1 = arith.constant 0 : i32
    return %c0_i32, %c0_i32_0 : i32, i32
  }
  func.func @transform_4(%arg0: i32) -> (i32, i32) {
    %c0_i32 = arith.constant 0 : i32
    %c0_i32_0 = arith.constant 0 : i32
    %c0_i32_1 = arith.constant 0 : i32
    return %c0_i32, %c0_i32_0 : i32, i32
  }
  func.func @transform_5(%arg0: i32) -> (i32, i32, i32) {
    %c0_i32 = arith.constant 0 : i32
    %c0_i32_0 = arith.constant 0 : i32
    %c0_i32_1 = arith.constant 0 : i32
    return %arg0, %c0_i32, %c0_i32_0 : i32, i32, i32
  }
}

</mosaic_0001>

<bundles_post_ra>
// kernel: tpu_custom_call.1
= control target key start
LH: loop header
LB: loop body
LE: loop exit
PB: predicated region body
PF: predicated region fallthrough
CT: control target
= control target key end

     0   :  { %10 = vsyncpa [#allocation3], 0  ;;  %s813_s0 = inlined_call_operand.hbm [shape: f32[2,8,512], index: 0, kind: input, shape index: {}]   ;;  %s814_s1 = inlined_call_operand.vmem [shape: f32[4,8], index: 1, kind: input, shape index: {}]   ;;  %s815_s2 = inlined_call_operand.vmem [shape: f32[4,1], index: 2, kind: input, shape index: {}]   ;;  %s816_s3 = inlined_call_operand.vmem [shape: f32[8,4], index: 3, kind: input, shape index: {}]   ;;  %s817_s4 = inlined_call_operand.vmem [shape: f32[8,1], index: 4, kind: input, shape index: {}]   ;;  %s818_s5 = inlined_call_operand.hbm [shape: f32[2,8,512], index: 5, kind: output, shape index: {}]  }
   0x1   :  { %12 = vsyncpa [#allocation3 + $0x1], 0 }
   0x2   :  { %13 = vsyncpa [#allocation4], 0 }
   0x3   :  { %15 = vsyncpa [#allocation4 + $0x1], 0  ;;  %s654_s18 = smov 0   ;;  %s656_s19 = smov 0  }
   0x4   :  { %s658_s20 = smov 0   ;;  %s660_s21 = smov 0  }
   0x5 LB: > { %s675_s22 = sadd.s32 4294967295, %s621_s21   ;;  %s448_s23 = sadd.s32 4294967294, %s621_s21   ;;  %s621_s21 = sphi %s660_s21, %s828_s21   ;;  %s617_s20 = sphi %s658_s20, %s827_s20   ;;  %s613_s19 = sphi %s656_s19, %s826_s19   ;;  %s609_s18 = sphi %s654_s18, %s825_s18  }
   0x6   : > { %s679_s24 = sadd.s32 1, %s621_s21   ;;  %s28_s25 = sadd.s32 1, %s617_s20 }
   0x7   : > { %s25_s26 = ssub.s32 %s621_s21, %s679_s24  ;;  %p35_p0 = scmp.ne.s32.totalorder %s617_s20, %s613_s19 }
   0x8   : > { %p26_p1 = scmp.eq.s32.totalorder %s25_s26, 0  ;;  %p36_p2 = scmp.eq.s32.totalorder %s621_s21, 0 }
   0x9   : > { %p41_p3 = scmp.ne.s32.totalorder %s613_s19, %s609_s18  ;;  %p42_p4 = scmp.eq.s32.totalorder %s675_s22, 0 }
   0xa   : > { %s691_s27 = scalar_select %p26_p1, %s617_s20, %s28_s25  }
   0xb   : > { %p693_p5 = por %p36_p2, %p35_p0  ;;  %p697_p6 = por %p42_p4, %p41_p3 }
   0xc   : > { %p149_p7 = scmp.eq.s32.totalorder %s675_s22, 1  ;;  %p155_p8 = scmp.eq.s32.totalorder %s448_s23, 1 }
   0xd   : > { %p481_p10 = scmp.lt.s32.totalorder %s621_s21, 2  ;;  %s187_s7 = sand.u32 1, %s617_s20  }
   0xe   : > { %p704_p11 = por %p149_p7, %p35_p0  ;;  %p708_p12 = por %p155_p8, %p41_p3 }
   0xf   : > { %s467_s8 = sshll.u32 %s621_s21, 5  ;;  %s451_s9 = sshll.u32 %s187_s7, 5 }
  0x10   : > { %s196_s12 = scalar_lea.hbm %s813_s0, %s467_s8  ;;  %s191_s14 = scalar_lea.vmem [#allocation2], %s451_s9 }
  0x11   : > { %s198_s13 = sshll.u32 %s196_s12, 4  ;;  %s200_s15 = sshll.u32 %s191_s14, 4  ;;  %s199_s13 = int_to_ptr.hbm [resolvable:$true] %s198_s13  ;;  %s201_s15 = int_to_ptr.vmem [resolvable:$true] %s200_s15 }
  0x12   : > { %p719_p13 = pnand %p481_p10, %p693_p5  ;;  %p454_p0 = scmp.ge.s32.totalorder %s621_s21, 1 }
  0x13   : > { %p205_p1 = scmp.lt.s32.totalorder %s621_s21, 3  ;;  %s188_s17 = scalar_lea.sflag [#allocation3], %s187_s7 }
  0x14   : > { %s525_s23 = sshra.s32 %s199_s13, 4  ;;  %p529_p3 = pneg %p719_p13  ;;  %s526_s23 = int_to_ptr.hbm [resolvable:$true] %s525_s23 }
  0x15   : > { %s527_s25 = scalar_lea.hbm %s526_s23, 32  ;;  %s532_s28 = scalar_lea.hbm %s813_s0, 64 }
  0x16   : > { %p528_p2 = scmp.ne.s32.totalorder %s526_s23, %s527_s25  ;;  %p533_p5 = scmp.lt.s32.totalorder %s526_s23, %s813_s0 }
  0x17   : > { %p534_p8 = scmp.lt.s32.totalorder %s532_s28, %s527_s25 }
  0x18   : > { %p530_p4 = pnand %p529_p3, %p528_p2 }
  0x19   : > { %p535_p10 = por %p534_p8, %p533_p5 }
  0x1a   : > { %p531_p7 = pneg %p530_p4 }
  0x1c   : > { %p536_p9 = pnand %p535_p10, %p531_p7 }
  0x1e   : > { %539 = shalt.err (!%p536_p9)
}
  0x1f   : > { %476 = dma.hbm_to_vmem [thread:$0]  (!%p719_p13), %s199_s13, 512, %s201_s15, %s188_s17  }
  0x20   : > { %p206_p2 = pnand %p454_p0, %p205_p1 }
  0x21   : > { %s740_s7 = sand.u32 (!%p206_p2), 1, %s613_s19  }
  0x22   : > { %209 = sbr.rel (%p206_p2) target bundleno = 604 (0x25c), region = 40  ;;  %s455_s11 = sshll.u32 (!%p206_p2), %s740_s7, 5 }
  0x23   : > { %s212_s12 = scalar_lea.sflag (!%p206_p2), [#allocation3], %s740_s7  ;;  %s215_s14 = scalar_lea.vmem (!%p206_p2), [#allocation2], %s455_s11 }
  0x27   : > { %600 = dma.done.wait (%p697_p6), %s212_s12, 512  }
  0x28   : > { %602 = vsyncadd (%p697_p6), %s212_s12, 4294966784  ;;  %v750_v0 = vld [vmem:[%s215_s14] sm:$0xff]  ;;  %v752_v1 = vld [vmem:[%s215_s14 + $0x8] sm:$0xff]  ;;  %vm255_vm0 = vcmask 64512   ;;  %vm305_vm5 = vcmask 1043456   ;;  %vm301_vm6 = vcmask 31744  }
  0x29   : > { %v754_v2 = vld [vmem:[%s215_s14 + $0x10] sm:$0xff]  ;;  %v247_v3 = vadd.f32 %v752_v1, %v750_v0  ;;  %v758_v4 = vld [vmem:[%s215_s14 + $0x18] sm:$0xff]  ;;  %v253_v9 = vld [vmem:[%s814_s1] sm:$0xf]  ;;  %v623_v28 = vmov 0   ;;  %s468_s8 = sshll.u32 %s675_s22, 5 }
  0x2a   : > { %v254_v10 = vld [vmem:[%s815_s2] sm:$0xf]  ;;  %516 = vset.pattern.permute.xlu0 %v623_v28  ;;  %s373_s10 = scalar_lea.hbm %s818_s5, %s468_s8  ;;  %s242_s12 = scalar_lea.vmem [#allocation5], %s455_s11 }
  0x2b   : > { %v248_v5 = vadd.f32 %v247_v3, %v754_v2  ;;  %v299_v27 = vld [vmem:[%s816_s3] sm:$0xff]  ;;  %s375_s14 = sshll.u32 %s242_s12, 4  ;;  %s377_s29 = sshll.u32 %s373_s10, 4  ;;  %s376_s14 = int_to_ptr.vmem [resolvable:$true] %s375_s14  ;;  %s378_s29 = int_to_ptr.hbm [resolvable:$true] %s377_s29 }
  0x2c   : > { %v300_v29 = vld [vmem:[%s817_s4] sm:$0xff]  ;;  %s362_s22 = scalar_lea.sflag [#allocation4], %s740_s7  ;;  %s569_s13 = sshra.s32 %s378_s29, 4  ;;  %s570_s13 = int_to_ptr.hbm [resolvable:$true] %s569_s13 }
  0x2d   : > { %v249_v6 = vadd.f32 %v248_v5, %v758_v4  ;;  %s571_s15 = scalar_lea.hbm %s570_s13, 32  ;;  %s575_s17 = scalar_lea.hbm %s818_s5, 64 }
  0x2e   : > { %p572_p6 = scmp.ne.s32.totalorder %s570_s13, %s571_s15  ;;  %p576_p0 = scmp.lt.s32.totalorder %s570_s13, %s818_s5 }
  0x2f   : > { %250 = vadd.xlane.f32.xlu0 %v249_v6  ;;  %p577_p1 = scmp.lt.s32.totalorder %s575_s17, %s571_s15 }
  0x30   : > { %p573_p9 = pnand %p572_p6, %p704_p11 }
  0x31   : > { %p578_p3 = por %p577_p1, %p576_p0 }
  0x32   : > { %p574_p13 = pneg %p573_p9 }
  0x34   : > { %p579_p4 = pnand %p578_p3, %p574_p13 }
  0xa2   : > { %v251_v7 = vpop.xlane.xlu0 %250 }
  0xa3   : > { %v252_v8 = vmul.f32 0.001953125, %v251_v7 }
  0xa5   : > { %274 = vmatpush.msra.mxu0 %v252_v8 }
  0xa6   : > { %457 = vmatmul.msk.f32.vlgmr.msra.gmra.mxu0 %vm255_vm0, %v253_v9 }
 0x123   : > { %v276_v11 = vpop.f32.mrf.mxu0 }
 0x124   : > { %v277_v12 = vadd.f32 %v276_v11, %v254_v10 }
 0x126   : > { %v458_v13 = vmul.f32 -1.442695, %v277_v12 }
 0x128   : > { %517 = vpow2.f32 %v458_v13 }
 0x12e   : > { %v518_v14 = vpop.eup %517 }
 0x12f   : > { %v282_v15 = vadd.f32 1.0, %v518_v14 }
 0x131   : > { %519 = vrcp.f32 %v282_v15  ;;  %v294_v19 = vand.u32 2147483648, %v282_v15  ;;  %v292_v21 = vand.u32 2147483647, %v282_v15  ;;  %vm288_vm2 = vweird.f32 %v282_v15 }
 0x133   : > { %v295_v23 = vor.u32 1.1754944e-38, %v294_v19  ;;  %vm293_vm4 = vcmp.eq.f32.partialorder %v292_v21, 8.507059e+37 }
 0x137   : > { %v520_v16 = vpop.eup %519 }
 0x138   : > { %v284_v17 = vmul.f32 %v520_v16, %v282_v15  ;;  %vm289_vm1 = vweird.f32 %v520_v16 }
 0x139   : > { %vm290_vm3 = vmor %vm288_vm2, %vm289_vm1 }
 0x13a   : > { %v285_v18 = vsub.f32 1.0, %v284_v17 }
 0x13c   : > { %v286_v20 = vmul.f32 %v520_v16, %v285_v18 }
 0x13e   : > { %v287_v22 = vadd.f32 %v520_v16, %v286_v20 }
 0x140   : > { %v291_v24 = vsel %vm290_vm3, %v520_v16, %v287_v22 }
 0x141   : > { %v296_v25 = vsel %vm293_vm4, %v295_v23, %v291_v24 }
 0x142   : > { %v298_v26 = vmul.f32 %v296_v25, %v277_v12 }
 0x144   : > { %459 = vmatpush.msk.msra.mxu1 %vm305_vm5, %v298_v26 }
 0x145   : > { %460 = vmatmul.msk.f32.vlgmr.msra.gmra.mxu1 %vm301_vm6, %v299_v27 }
 0x1c2   : > { %v326_v30 = vpop.f32.mrf.mxu1 }
 0x1c3   : > { %v327_v31 = vadd.f32 %v326_v30, %v300_v29 }
 0x1c5   : > { %v461_v32 = vmul.f32 -1.442695, %v327_v31 }
 0x1c7   : > { %521 = vpow2.f32 %v461_v32 }
 0x1cd   : > { %v522_v33 = vpop.eup %521 }
 0x1ce   : > { %v332_v34 = vadd.f32 1.0, %v522_v33 }
 0x1d0   : > { %523 = vrcp.f32 %v332_v34  ;;  %v344_v38 = vand.u32 2147483648, %v332_v34  ;;  %v342_v40 = vand.u32 2147483647, %v332_v34  ;;  %vm338_vm8 = vweird.f32 %v332_v34 }
 0x1d2   : > { %v345_v42 = vor.u32 1.1754944e-38, %v344_v38  ;;  %vm343_vm10 = vcmp.eq.f32.partialorder %v342_v40, 8.507059e+37 }
 0x1d6   : > { %v524_v35 = vpop.eup %523 }
 0x1d7   : > { %v334_v36 = vmul.f32 %v524_v35, %v332_v34  ;;  %vm339_vm7 = vweird.f32 %v524_v35 }
 0x1d8   : > { %vm340_vm9 = vmor %vm338_vm8, %vm339_vm7 }
 0x1d9   : > { %v335_v37 = vsub.f32 1.0, %v334_v36 }
 0x1db   : > { %v336_v39 = vmul.f32 %v524_v35, %v335_v37 }
 0x1dd   : > { %v337_v41 = vadd.f32 %v524_v35, %v336_v39 }
 0x1df   : > { %v341_v43 = vsel %vm340_vm9, %v524_v35, %v337_v41 }
 0x1e0   : > { %v346_v44 = vsel %vm343_vm10, %v345_v42, %v341_v43 }
 0x1e1   : > { %350 = vperm.xlu0 %516, %v346_v44  }
 0x253   : > { %v351_v45 = vpop.permute.xlu0 %350 }
 0x254   : > { %v353_v46 = vmul.f32 %v351_v45, %v750_v0  ;;  %v354_v47 = vmul.f32 %v351_v45, %v752_v1  ;;  %v355_v48 = vmul.f32 %v351_v45, %v754_v2  ;;  %v356_v49 = vmul.f32 %v351_v45, %v758_v4 }
 0x256   : > { %357 = vst [vmem:[%s242_s12] sm:$0xff] %v353_v46 }
 0x257   : > { %358 = vst [vmem:[%s242_s12 + $0x8] sm:$0xff] %v354_v47 }
 0x258   : > { %359 = vst [vmem:[%s242_s12 + $0x10] sm:$0xff] %v355_v48 }
 0x259   : > { %360 = vst [vmem:[%s242_s12 + $0x18] sm:$0xff] %v356_v49 }
 0x25a   : > { %582 = shalt.err (!%p579_p4)
}
 0x25b   : > { %471 = dma.vmem_to_hbm [thread:$0]  (%p704_p11), %s376_s14, 512, %s378_s29, %s362_s22  }
 0x25c PF: > { %s389_s7 = sand.u32 1, %s609_s18   ;;  %p824_p7 = scmp.ge.s32.totalorder %s621_s21, 2 }
 0x25d   : > { %s390_s26 = scalar_lea.sflag [#allocation4], %s389_s7 }
 0x25e   : > { %p478_p5 = pnand %p824_p7, %p708_p12 }
 0x260   : > { %p479_p8 = pneg %p478_p5 }
 0x262   : > { %604 = dma.done.wait (%p479_p8), %s390_s26, 512  }
 0x263   : > { %606 = vsyncadd (%p479_p8), %s390_s26, 4294966784  ;;  %p18_p10 = scmp.ge.s32.totalorder %s679_s24, 4   ;;  %s825_s18 = smov %s613_s19 }
 0x264   : > { %s826_s19 = smov %s617_s20  ;;  %s827_s20 = smov %s691_s27 }
 0x265   : > { %s828_s21 = smov %s679_s24  ;;  %20 = sbr.rel (!%p18_p10) target bundleno = 5 (0x5), region = 85 }
 0x26a   :  { %396 = vsyncpa [#allocation3], 1 }
 0x26b   :  { %398 = vsyncpa [#allocation3 + $0x1], 1 }
 0x26c   :  { %399 = vsyncpa [#allocation4], 1 }
 0x26d   :  { %401 = vsyncpa [#allocation4 + $0x1], 1 }

</bundles_post_ra>
